<compile_context>
chip_gen: v7x
topology: tpu7x:2x2x1
jax: 0.10.0
libtpu: 0.0.40
codegen_flags: <defaults>
</compile_context>

<pallas_src>
import functools

import jax
import jax.numpy as jnp
from jax.experimental import pallas as pl
from jax.experimental.pallas import tpu as pltpu


_ACTS = {
    "tanh": jnp.tanh,
    "sigmoid": jax.nn.sigmoid,
    "relu": lambda v: jnp.maximum(v, 0.0),
}


def _round_up(x, m):
    return (x + m - 1) // m * m


def _choose_tile_b(batch):
    """Batch tile size.

    Large tiles amortize the ~0.35 us per-grid-step overhead; at large batch we
    keep >= 8 grid steps so both v7x TensorCores (grid axis is "parallel") each
    get >= 4 steps.  Capped at 4096: live VMEM (x tile x2, (tile_b,128) f32
    temps, (tile_b,128) f32 output x2, packed params) stays ~12 MiB, comfortably
    under the 32 MiB default scoped VMEM on all generations including v7x.
    """
    if batch <= 512:
        return max(8, _round_up(batch, 8))
    t = _round_up(pl.cdiv(batch, 8), 256)
    return int(min(max(t, 512), 4096))


def _pack_params(weights, biases, n_fp, param_dtype):
    """Pack all layer weights and biases into one dense zero-padded (rows, C) buffer.

    Row layout (all block starts aligned to the dtype's sublane packing):
      rows [w_offs[0], +n_fp)      : layer-0 weight (exactly n_fp used rows)
      rows [w_offs[i], +C)  (i>0)  : layer-i weight (C used rows, padded rows zero)
      row  b_row0 + i              : layer-i bias
    Padded rows/cols are exact zeros, so padded activation columns (e.g.
    sigmoid(0)=0.5) contribute exactly 0 downstream and the padded output columns
    are exactly 0.
    """
    n_layers = len(weights)
    outs = [int(w.shape[1]) for w in weights]
    C = max(_round_up(o, 128) for o in outs)          # common lane-dense width
    itemsize = jnp.dtype(param_dtype).itemsize
    row_align = {4: 8, 2: 16, 1: 32}.get(itemsize, 8)  # sublane packing per dtype

    blocks, w_offs, w_rows = [], [], []
    off = 0
    for i, w in enumerate(weights):
        in_i, out_i = int(w.shape[0]), int(w.shape[1])
        if i == 0:
            used_rows = in_i                       # x keeps its native feature width
            alloc_rows = _round_up(in_i, row_align)
        else:
            used_rows = C                          # hidden activations are C wide
            alloc_rows = C
        blk = jnp.zeros((alloc_rows, C), param_dtype).at[:in_i, :out_i].set(
            w.astype(param_dtype))
        blocks.append(blk)
        w_offs.append(off)
        w_rows.append(used_rows)
        off += alloc_rows

    b_row0 = off
    b_blk = jnp.zeros((_round_up(n_layers, row_align), C), param_dtype)
    for i, b in enumerate(biases):
        b_blk = b_blk.at[i, :outs[i]].set(jnp.asarray(b, param_dtype).reshape(-1))
    blocks.append(b_blk)

    packed = jnp.concatenate(blocks, axis=0)
    return packed, tuple(w_offs), tuple(w_rows), b_row0, C


def _make_bpnn_kernel(w_offs, w_rows, b_row0, activations, c_out,
                      mxu_dtype, bf16_activations):
    """Kernel closure for a fixed (static) layer/activation structure."""
    n_layers = len(w_offs)
    act_fns = tuple(_ACTS[a] for a in activations)
    act_dtype = jnp.bfloat16 if bf16_activations else jnp.float32

    def kernel(x_ref, p_ref, o_ref):
        h = x_ref[...]                                       # (tile_b, n_fp)
        z = None
        for i in range(n_layers):
            w = p_ref[w_offs[i]:w_offs[i] + w_rows[i], :]    # static VMEM slice
            b = p_ref[b_row0 + i:b_row0 + i + 1, :].astype(jnp.float32)  # (1, C)
            # MXU: bf16 (or f32) operands, f32 accumulation; bias add in f32.
            z = jnp.dot(h.astype(mxu_dtype), w,
                        preferred_element_type=jnp.float32) + b
            if i < n_layers - 1:
                # Activation in f32 by default (v5e-safe); bf16 opt-in (v6e/v7x).
                h = act_fns[i](z.astype(act_dtype))
        # Lane-dense store: full 128-aligned output width (padded cols are exact
        # zeros); the real [:, :n_out] slice happens in the wrapper.
        o_ref[...] = z[:, :c_out].astype(o_ref.dtype)

    return kernel


def _params_block_spec(shape):
    """Grid-invariant params: try to single-buffer them (saves one redundant VMEM
    copy; matters most on v7x's smaller scoped VMEM when tile_b is large)."""
    try:
        return pl.BlockSpec(shape, lambda i: (0, 0), pipeline_mode=pl.Buffered(1))
    except (TypeError, AttributeError):
        # Fallback: default (double-buffered) behaviour; params are small anyway.
        return pl.BlockSpec(shape, lambda i: (0, 0))


def bpnn_forward(x, weights, biases, activations, *,
                 mxu_dtype=jnp.bfloat16, bf16_activations=False):
    """Run the whole MLP forward in a single batch-gridded Pallas kernel.

    x:            (B, n_fp) float32
    weights:      list of (in_i, out_i) arrays (pre-transposed vs torch's (out, in))
    biases:       list of (1, out_i) arrays
    activations:  tuple of str, one per hidden layer (len == len(weights) - 1)
    mxu_dtype:    matmul operand dtype (bfloat16 default; float32 for full precision)
    bf16_activations: compute hidden activations in bf16 (v6e/v7x only; NOT v5e)
    """
    assert len(weights) == len(biases) == len(activations) + 1
    batch, n_fp = x.shape
    n_out = int(weights[-1].shape[1])

    packed, w_offs, w_rows, b_row0, C = _pack_params(weights, biases, n_fp, mxu_dtype)
    c_out = _round_up(n_out, 128)      # lane-dense output width
    assert c_out <= C

    tile_b = _choose_tile_b(batch)
    n_tiles = pl.cdiv(batch, tile_b)   # ragged last tile handled by Pallas
                                       # (OOB reads unspecified / OOB writes dropped;
                                       # safe because the MLP is purely row-wise).

    kernel = _make_bpnn_kernel(w_offs, w_rows, b_row0, tuple(activations),
                               c_out, mxu_dtype, bf16_activations)

    y_pad = pl.pallas_call(
        kernel,
        out_shape=jax.ShapeDtypeStruct((batch, c_out), jnp.float32),
        grid=(n_tiles,),
        in_specs=[
            pl.BlockSpec((tile_b, n_fp), lambda i: (i, 0)),   # batch tile: pipelined
            _params_block_spec(packed.shape),                 # params: VMEM-resident
        ],
        out_specs=pl.BlockSpec((tile_b, c_out), lambda i: (i, 0)),  # lane-dense
        compiler_params=pltpu.CompilerParams(
            dimension_semantics=("parallel",)),   # v7x: shard batch tiles across 2 TCs
    )(x, packed)
    return y_pad[:, :n_out]


def init_bpnn_params(key, n_fp, layer_nodes, n_output):
    """Deterministic parameter init matching BPNN's Linear shapes.

    Returns weights as (in, out) and biases as (1, out).
    """
    dims = [n_fp] + list(layer_nodes) + [n_output]
    weights, biases = [], []
    for i in range(len(dims) - 1):
        key, wk, bk = jax.random.split(key, 3)
        fan_in, fan_out = dims[i], dims[i + 1]
        bound = 1.0 / jnp.sqrt(fan_in)   # same scale as torch.nn.Linear default init
        weights.append(jax.random.uniform(wk, (fan_in, fan_out), jnp.float32, -bound, bound))
        biases.append(jax.random.uniform(bk, (1, fan_out), jnp.float32, -bound, bound))
    return weights, biases


def bpnn_reference(x, weights, biases, activations):
    """Plain-JAX reference for correctness checking."""
    h = x
    for i, act in enumerate(activations):
        h = _ACTS[act](h @ weights[i] + biases[i])
    return h @ weights[-1] + biases[-1]


if __name__ == "__main__":
    # BPNN(n_fp=32, layer_nodes=[64, 32], activations=["tanh", "relu"], n_output=1)
    n_fp = 32
    layer_nodes = [64, 32]
    activations = ("tanh", "relu")
    n_output = 1

    key = jax.random.PRNGKey(0)
    key, xk_small, xk_big, xk_rag = jax.random.split(key, 4)
    weights, biases = init_bpnn_params(key, n_fp, layer_nodes, n_output)

    run_bf16 = jax.jit(functools.partial(bpnn_forward, activations=activations))
    run_f32 = jax.jit(functools.partial(bpnn_forward, activations=activations,
                                        mxu_dtype=jnp.float32))

    # 1) Small batch (single block), f32 MXU operands: strict structural check
    #    (validates the zero-padded packing + lane-dense output path exactly).
    x_small = jax.random.normal(xk_small, (8, n_fp), jnp.float32)
    y_small = run_f32(x_small, weights, biases)
    jax.block_until_ready(y_small)
    y_small_ref = bpnn_reference(x_small, weights, biases, activations)
    assert y_small.shape == (8, n_output)
    assert jnp.allclose(y_small, y_small_ref, atol=1e-4, rtol=1e-4), \
        "Pallas output mismatch vs reference (small batch, f32)"

    # 2) Larger aligned batch (pipelined 2-tile grid), default bf16 MXU operands.
    x_big = jax.random.normal(xk_big, (1024, n_fp), jnp.float32)
    y_big = run_bf16(x_big, weights, biases)
    jax.block_until_ready(y_big)
    y_big_ref = bpnn_reference(x_big, weights, biases, activations)
    assert y_big.shape == (1024, n_output)
    assert jnp.allclose(y_big, y_big_ref, atol=3e-2, rtol=3e-2), \
        "Pallas output mismatch vs reference (large batch, bf16 MXU)"

    # 3) Ragged batch (not a tile multiple): exercises the no-jnp.pad boundary path.
    x_rag = jax.random.normal(xk_rag, (777, n_fp), jnp.float32)
    y_rag = run_bf16(x_rag, weights, biases)
    jax.block_until_ready(y_rag)
    y_rag_ref = bpnn_reference(x_rag, weights, biases, activations)
    assert y_rag.shape == (777, n_output)
    assert jnp.allclose(y_rag, y_rag_ref, atol=3e-2, rtol=3e-2), \
        "Pallas output mismatch vs reference (ragged batch, bf16 MXU)"

    print("KERNEL_OK")
</pallas_src>

<mosaic_0001>
module attributes {stable_mosaic.version = 11 : i64} {
  func.func @kernel(%arg0: i32, %arg1: memref<8x32xf32, #tpu.memory_space<vmem>>, %arg2: memref<296x128xf32, #tpu.memory_space<vmem>>, %arg3: memref<8x128xf32, #tpu.memory_space<vmem>>) attributes {dimension_semantics = [#tpu.dimension_semantics<parallel>], iteration_bounds = array<i64: 1>, scalar_prefetch = 0 : i64, scratch_operands = 0 : i64, tpu.core_type = #tpu.core_type<tc>, window_params = [{transform_indices = @transform_0, window_bounds = array<i64: 8, 32>}, {pipeline_mode = #tpu.pipeline_mode<synchronous>, transform_indices = @transform_1, window_bounds = array<i64: 296, 128>}, {transform_indices = @transform_2, window_bounds = array<i64: 8, 128>}]} {
    %c0 = arith.constant 0 : index
    %c0_0 = arith.constant 0 : index
    %0 = vector.load %arg1[%c0, %c0_0] : memref<8x32xf32, #tpu.memory_space<vmem>>, vector<8x32xf32>
    %c0_1 = arith.constant 0 : index
    %c0_2 = arith.constant 0 : index
    %1 = vector.load %arg2[%c0_1, %c0_2] : memref<296x128xf32, #tpu.memory_space<vmem>>, vector<32x128xf32>
    %c288 = arith.constant 288 : index
    %c0_3 = arith.constant 0 : index
    %2 = vector.load %arg2[%c288, %c0_3] : memref<296x128xf32, #tpu.memory_space<vmem>>, vector<1x128xf32>
    %cst = arith.constant dense<0.000000e+00> : vector<8x128xf32>
    %3 = tpu.matmul %0, %1, %cst {dimension_numbers = #tpu.dot_dimension_numbers<[1], [0], [0], [1], [0, 0, 1, 1], [], []>} : vector<8x32xf32>, vector<32x128xf32>, vector<8x128xf32> -> vector<8x128xf32>
    %4 = vector.broadcast %2 : vector<1x128xf32> to vector<8x128xf32>
    %5 = arith.addf %3, %4 : vector<8x128xf32>
    %6 = math.tanh %5 : vector<8x128xf32>
    %c32 = arith.constant 32 : index
    %c0_4 = arith.constant 0 : index
    %7 = vector.load %arg2[%c32, %c0_4] : memref<296x128xf32, #tpu.memory_space<vmem>>, vector<128x128xf32>
    %c289 = arith.constant 289 : index
    %c0_5 = arith.constant 0 : index
    %8 = vector.load %arg2[%c289, %c0_5] : memref<296x128xf32, #tpu.memory_space<vmem>>, vector<1x128xf32>
    %cst_6 = arith.constant dense<0.000000e+00> : vector<8x128xf32>
    %9 = tpu.matmul %6, %7, %cst_6 {dimension_numbers = #tpu.dot_dimension_numbers<[1], [0], [0], [1], [0, 0, 1, 1], [], []>} : vector<8x128xf32>, vector<128x128xf32>, vector<8x128xf32> -> vector<8x128xf32>
    %10 = vector.broadcast %8 : vector<1x128xf32> to vector<8x128xf32>
    %11 = arith.addf %9, %10 : vector<8x128xf32>
    %cst_7 = arith.constant 0.000000e+00 : f32
    %12 = vector.broadcast %cst_7 : f32 to vector<8x128xf32>
    %13 = arith.maximumf %11, %12 : vector<8x128xf32>
    %c160 = arith.constant 160 : index
    %c0_8 = arith.constant 0 : index
    %14 = vector.load %arg2[%c160, %c0_8] : memref<296x128xf32, #tpu.memory_space<vmem>>, vector<128x128xf32>
    %c290 = arith.constant 290 : index
    %c0_9 = arith.constant 0 : index
    %15 = vector.load %arg2[%c290, %c0_9] : memref<296x128xf32, #tpu.memory_space<vmem>>, vector<1x128xf32>
    %cst_10 = arith.constant dense<0.000000e+00> : vector<8x128xf32>
    %16 = tpu.matmul %13, %14, %cst_10 {dimension_numbers = #tpu.dot_dimension_numbers<[1], [0], [0], [1], [0, 0, 1, 1], [], []>} : vector<8x128xf32>, vector<128x128xf32>, vector<8x128xf32> -> vector<8x128xf32>
    %17 = vector.broadcast %15 : vector<1x128xf32> to vector<8x128xf32>
    %18 = arith.addf %16, %17 : vector<8x128xf32>
    %c0_11 = arith.constant 0 : index
    %c0_12 = arith.constant 0 : index
    %19 = vector.load %arg3[%c0_11, %c0_12] : memref<8x128xf32, #tpu.memory_space<vmem>>, vector<8x128xf32>
    tpu.vector_store %arg3[%c0_11, %c0_12], %18 {strides = array<i32>} : memref<8x128xf32, #tpu.memory_space<vmem>>, vector<8x128xf32>,
    return
  }
  func.func @transform_0(%arg0: i32) -> (i32, i32) {
    %c0_i32 = arith.constant 0 : i32
    %c0_i32_0 = arith.constant 0 : i32
    return %arg0, %c0_i32 : i32, i32
  }
  func.func @transform_1(%arg0: i32) -> (i32, i32) {
    %c0_i32 = arith.constant 0 : i32
    %c0_i32_0 = arith.constant 0 : i32
    %c0_i32_1 = arith.constant 0 : i32
    return %c0_i32, %c0_i32_0 : i32, i32
  }
  func.func @transform_2(%arg0: i32) -> (i32, i32) {
    %c0_i32 = arith.constant 0 : i32
    %c0_i32_0 = arith.constant 0 : i32
    return %arg0, %c0_i32 : i32, i32
  }
}

</mosaic_0001>

<bundles_post_ra>
// kernel: bpnn_forward.1
= control target key start
LH: loop header
LB: loop body
LE: loop exit
PB: predicated region body
PF: predicated region fallthrough
CT: control target
= control target key end

     0   :  { %v467_v0 = vmov 0.0|0.0   ;;  %vm468_vm0 = vmmov 0   ;;  %v469_v4 = vmov 0.0   ;;  %vm21_vm1 = vcmask 261120   ;;  %s629_s1 = inlined_call_operand.vmem [shape: f32[296,128], index: 1, kind: input, shape index: {}]   ;;  %s630_s0 = inlined_call_operand.vmem [shape: f32[8,32], index: 0, kind: input, shape index: {}]   ;;  %s631_s2 = inlined_call_operand.vmem [shape: f32[8,128], index: 2, kind: output, shape index: {}]  }
   0x1   :  { %408 = vmatprep.subr.bf16.mxu0 %v467_v0  ;;  %v12_v1 = vld [vmem:[%s629_s1] sm:$0xff]  ;;  %v13_v2 = vld [vmem:[%s629_s1 + $0x8] sm:$0xff]  ;;  %v14_v3 = vld [vmem:[%s629_s1 + $0x10] sm:$0xff]  ;;  %335 = vmatprep.mubr.msk.f32.mxu0 %vm468_vm0, %v469_v4 }
   0x2   :  { %v409_v5 = vpack.c.bf16 %v13_v2, %v12_v1  ;;  %v15_v6 = vld [vmem:[%s629_s1 + $0x18] sm:$0xff]  ;;  %414 = vmatprep.subr.bf16.mxu1 %v467_v0  ;;  %v96_v7 = vld [vmem:[%s629_s1 + $0x20] sm:$0xff]  ;;  %370 = vmatprep.mubr.msk.f32.mxu1 %vm468_vm0, %v469_v4  ;;  %v97_v8 = vld [vmem:[%s629_s1 + $0x28] sm:$0xff] }
   0x3   :  { %v98_v9 = vld [vmem:[%s629_s1 + $0x30] sm:$0xff]  ;;  %v99_v10 = vld [vmem:[%s629_s1 + $0x38] sm:$0xff]  ;;  %v412_v11 = vpack.c.bf16 %v15_v6, %v14_v3  ;;  %v415_v12 = vpack.c.bf16 %v97_v8, %v96_v7  ;;  %v100_v14 = vld [vmem:[%s629_s1 + $0x40] sm:$0xff] }
   0x4   :  { %410 = vmatpush3.bf16.msra.mxu0 %v409_v5  ;;  %v418_v13 = vpack.c.bf16 %v99_v10, %v98_v9  ;;  %v101_v15 = vld [vmem:[%s629_s1 + $0x48] sm:$0xff]  ;;  %v11_v16 = vld [vmem:[%s630_s0] sm:$0xff]  ;;  %v102_v18 = vld [vmem:[%s629_s1 + $0x50] sm:$0xff] }
   0x5   :  { %411 = vmatprep.subr.bf16.mxu0 %v467_v0  ;;  %416 = vmatpush3.bf16.msra.mxu1 %v415_v12  ;;  %v421_v17 = vpack.c.bf16 %v101_v15, %v100_v14  ;;  %v103_v19 = vld [vmem:[%s629_s1 + $0x58] sm:$0xff]  ;;  %v104_v21 = vld [vmem:[%s629_s1 + $0x60] sm:$0xff]  ;;  %v105_v22 = vld [vmem:[%s629_s1 + $0x68] sm:$0xff] }
   0x6   :  { %417 = vmatprep.subr.bf16.mxu1 %v467_v0  ;;  %v424_v20 = vpack.c.bf16 %v103_v19, %v102_v18  ;;  %v427_v23 = vpack.c.bf16 %v105_v22, %v104_v21  ;;  %v106_v24 = vld [vmem:[%s629_s1 + $0x70] sm:$0xff]  ;;  %v107_v25 = vld [vmem:[%s629_s1 + $0x78] sm:$0xff]  ;;  %v108_v27 = vld [vmem:[%s629_s1 + $0x80] sm:$0xff] }
   0x7   :  { %v430_v26 = vpack.c.bf16 %v107_v25, %v106_v24  ;;  %v109_v28 = vld [vmem:[%s629_s1 + $0x88] sm:$0xff]  ;;  %v110_v30 = vld [vmem:[%s629_s1 + $0x90] sm:$0xff]  ;;  %v111_v31 = vld [vmem:[%s629_s1 + $0x98] sm:$0xff] }
   0x8   :  { %413 = vmatpush3.bf16.msra.mxu0 %v412_v11  ;;  %v433_v29 = vpack.c.bf16 %v109_v28, %v108_v27  ;;  %v436_v32 = vpack.c.bf16 %v111_v31, %v110_v30  ;;  %v188_v33 = vld [vmem:[%s629_s1 + $0xa0] sm:$0xff]  ;;  %v189_v34 = vld [vmem:[%s629_s1 + $0xa8] sm:$0xff]  ;;  %v190_v35 = vld [vmem:[%s629_s1 + $0xb0] sm:$0xff] }
   0x9   :  { %438 = vmatprep.subr.bf16.mxu0 %v467_v0  ;;  %419 = vmatpush3.bf16.msra.mxu1 %v418_v13  ;;  %v439_v36 = vpack.c.bf16 %v189_v34, %v188_v33  ;;  %v191_v37 = vld [vmem:[%s629_s1 + $0xb8] sm:$0xff]  ;;  %v192_v39 = vld [vmem:[%s629_s1 + $0xc0] sm:$0xff]  ;;  %v193_v40 = vld [vmem:[%s629_s1 + $0xc8] sm:$0xff] }
   0xa   :  { %420 = vmatprep.subr.bf16.mxu1 %v467_v0  ;;  %v442_v38 = vpack.c.bf16 %v191_v37, %v190_v35  ;;  %v445_v41 = vpack.c.bf16 %v193_v40, %v192_v39  ;;  %v194_v42 = vld [vmem:[%s629_s1 + $0xd0] sm:$0xff]  ;;  %v195_v43 = vld [vmem:[%s629_s1 + $0xd8] sm:$0xff]  ;;  %v196_v45 = vld [vmem:[%s629_s1 + $0xe0] sm:$0xff] }
   0xb   :  { %336 = vmatmul.mubr.msk.f32.vlgmr.msra.gmra.mrb[0].mxu0 %vm21_vm1, %v11_v16  ;;  %v448_v44 = vpack.c.bf16 %v195_v43, %v194_v42  ;;  %v197_v46 = vld [vmem:[%s629_s1 + $0xe8] sm:$0xff]  ;;  %v198_v48 = vld [vmem:[%s629_s1 + $0xf0] sm:$0xff]  ;;  %v199_v49 = vld [vmem:[%s629_s1 + $0xf8] sm:$0xff] }
   0xc   :  { %405 = vmatprep.mubr.msk.f32.mxu0 %vm468_vm0, %v469_v4  ;;  %440 = vmatpush3.bf16.msra.mxu0 %v439_v36  ;;  %v451_v47 = vpack.c.bf16 %v197_v46, %v196_v45  ;;  %v454_v50 = vpack.c.bf16 %v199_v49, %v198_v48  ;;  %v200_v51 = vld [vmem:[%s629_s1 + $0x100] sm:$0xff]  ;;  %v201_v52 = vld [vmem:[%s629_s1 + $0x108] sm:$0xff]  ;;  %v202_v59 = vld [vmem:[%s629_s1 + $0x110] sm:$0xff] }
   0xd   :  { %422 = vmatpush3.bf16.msra.mxu1 %v421_v17  ;;  %441 = vmatprep.subr.bf16.mxu0 %v467_v0  ;;  %v457_v53 = vpack.c.bf16 %v201_v52, %v200_v51  ;;  %v284_v54 = vld [vmem:[%s629_s1 + $0x120] ss:$0 sm:$0xff]  ;;  %v203_v60 = vld [vmem:[%s629_s1 + $0x118] sm:$0xff]  ;;  %v286_v62 = vld [vmem:[%s629_s1 + $0x121] ss:$0 sm:$0xff] }
   0xe   :  { %423 = vmatprep.subr.bf16.mxu1 %v467_v0  ;;  %v460_v61 = vpack.c.bf16 %v203_v60, %v202_v59  ;;  %v287_v3 = vld [vmem:[%s629_s1 + $0x122] ss:$0 sm:$0xff] }
  0x10   :  { %443 = vmatpush3.bf16.msra.mxu0 %v442_v38 }
  0x11   :  { %425 = vmatpush3.bf16.msra.mxu1 %v424_v20  ;;  %444 = vmatprep.subr.bf16.mxu0 %v467_v0 }
  0x12   :  { %426 = vmatprep.subr.bf16.mxu1 %v467_v0 }
  0x14   :  { %446 = vmatpush3.bf16.msra.mxu0 %v445_v41 }
  0x15   :  { %428 = vmatpush3.bf16.msra.mxu1 %v427_v23  ;;  %447 = vmatprep.subr.bf16.mxu0 %v467_v0 }
  0x16   :  { %429 = vmatprep.subr.bf16.mxu1 %v467_v0 }
  0x18   :  { %449 = vmatpush3.bf16.msra.mxu0 %v448_v44 }
  0x19   :  { %431 = vmatpush3.bf16.msra.mxu1 %v430_v26  ;;  %450 = vmatprep.subr.bf16.mxu0 %v467_v0 }
  0x1a   :  { %432 = vmatprep.subr.bf16.mxu1 %v467_v0 }
  0x1c   :  { %452 = vmatpush3.bf16.msra.mxu0 %v451_v47 }
  0x1d   :  { %434 = vmatpush3.bf16.msra.mxu1 %v433_v29  ;;  %453 = vmatprep.subr.bf16.mxu0 %v467_v0 }
  0x1e   :  { %435 = vmatprep.subr.bf16.mxu1 %v467_v0 }
  0x20   :  { %455 = vmatpush3.bf16.msra.mxu0 %v454_v50 }
  0x21   :  { %437 = vmatpush3.bf16.msra.mxu1 %v436_v32  ;;  %456 = vmatprep.subr.bf16.mxu0 %v467_v0 }
  0x24   :  { %458 = vmatpush3.bf16.msra.mxu0 %v457_v53 }
  0x25   :  { %459 = vmatprep.subr.bf16.mxu0 %v467_v0 }
  0x28   :  { %461 = vmatpush3.bf16.msra.mxu0 %v460_v61 }
  0xde   :  { %v91_v55 = vpop.f32.mrb[0].mxu0 }
  0xdf   :  { %v92_v56 = vadd.f32 %v284_v54, %v91_v55  ;;  %v337_v57 = vpop.f32.mrb[1].mxu0 }
  0xe1   :  { %465 = vtanh.f32 %v92_v56 }
  0xeb   :  { %v466_v58 = vpop.eup %465 }
  0xec   :  { %371 = vmatmul.mubr.f32.vlgmr.msra.gmra.mrb[0].mxu1 %v466_v58 }
 0x1bf   :  { %v183_v63 = vpop.f32.mrb[0].mxu1 }
 0x1c0   :  { %v184_v0 = vadd.f32 %v286_v62, %v183_v63  ;;  %v372_v1 = vpop.f32.mrb[1].mxu1 }
 0x1c2   :  { %v187_v2 = vmax.f32 %v184_v0, 0.0 }
 0x1c4   :  { %406 = vmatmul.mubr.f32.vlgmr.msra.gmra.mrb[2].mxu0 %v187_v2 }
 0x297   :  { %v275_v4 = vpop.f32.mrb[2].mxu0 }
 0x298   :  { %v276_v5 = vadd.f32 %v287_v3, %v275_v4  ;;  %v407_v6 = vpop.f32.mrb[3].mxu0 }
 0x29a   :  { %279 = vst [vmem:[%s631_s2] sm:$0xff] %v276_v5 }

</bundles_post_ra>
